<compile_context>
chip_gen: v7x
topology: tpu7x:2x2x1
jax: 0.10.0
libtpu: 0.0.40
codegen_flags: <defaults>
</compile_context>

<pallas_src>
import numpy as np
import jax
import jax.numpy as jnp
from jax.experimental import pallas as pl
from jax.experimental.pallas import tpu as pltpu


# ----------------------------------------------------------------------------
# Cayley-Dickson multiplication table (stands in for the repo's get_comp_mat).
# e_i * e_j = sign * e_{i ^ j} for the 2^m-dim Cayley-Dickson algebra.
# ----------------------------------------------------------------------------
def _cd_mult(i, j, n):
    """Returns (sign, index) of e_i * e_j in the n-dim Cayley-Dickson algebra."""
    if n == 1:
        return 1, 0
    m = n // 2
    if i < m and j < m:
        return _cd_mult(i, j, m)
    if i < m and j >= m:
        s, k = _cd_mult(j - m, i, m)
        return s, k + m
    if i >= m and j < m:
        s, k = _cd_mult(i - m, j, m)
        return (s if j == 0 else -s), k + m
    s, k = _cd_mult(j - m, i - m, m)
    return (-s if (j - m) == 0 else s), k


def get_comp_tables(num_components):
    """sign[i, j], widx[i, j]: term sign * fc_{widx}(x_j) contributes to y_i."""
    sign = np.zeros((num_components, num_components), dtype=np.float32)
    widx = np.zeros((num_components, num_components), dtype=np.int64)
    for i in range(num_components):
        for j in range(num_components):
            a = i ^ j                      # weight component mixing x_j into y_i
            s, k = _cd_mult(a, j, num_components)
            assert k == i
            sign[i, j] = float(s)
            widx[i, j] = a
    # TODO(synk): the repo's get_comp_mat/check_input/get_c sources are not
    # provided; we use the standard Cayley-Dickson (left-multiplication) table
    # and treat the 0-index (real) weight entries as +1 instead of np.sign(0)=0.
    return sign, widx


# ----------------------------------------------------------------------------
# Small helpers.
# ----------------------------------------------------------------------------
def _round_up(x, m):
    return ((x + m - 1) // m) * m


def _pick_tile(dim, preferred, align):
    """Largest multiple of `align` that divides `dim`, <= preferred;
    else fall back to the full extent (always a legal block)."""
    t = min((preferred // align) * align, (dim // align) * align)
    while t >= align:
        if dim % t == 0:
            return t
        t -= align
    return dim


def _vmem_cap_bytes():
    cap = 128 * 1024 * 1024
    try:
        info = pltpu.get_tpu_info()
        cap = int(getattr(info, "vmem_capacity_bytes", cap))
    except Exception:
        pass
    # Leave headroom for Mosaic internal scratch / semaphores: ~48 MiB budget
    # on the 64 MiB-VMEM v7x, capped at 96 MiB on 128 MiB v5e/v6e.
    return min(cap * 3 // 4, 96 * 1024 * 1024)


# ----------------------------------------------------------------------------
# Pallas kernel: tiled matmul, f32 accumulation directly in the output block
# (its index_map ignores k, so it stays VMEM-resident across the K axis).
# Bias row is added once at the last K step.
# ----------------------------------------------------------------------------
def _matmul_bias_kernel(x_ref, w_ref, b_ref, o_ref):
    k = pl.program_id(2)
    contrib = jnp.dot(x_ref[...], w_ref[...], preferred_element_type=jnp.float32)

    @pl.when(k == 0)
    def _():
        o_ref[...] = contrib

    @pl.when(k != 0)
    def _():
        o_ref[...] += contrib

    @pl.when(k == pl.num_programs(2) - 1)
    def _():
        o_ref[...] += b_ref[...]


def _pallas_matmul_bias(x, w, b_row):
    """out = x @ w + b_row  (f32 accumulation, f32 output).

    x: (M, K), w: (K, N) same compute dtype; b_row: (1, N) f32.
    K and N are either multiples of 128 or small full extents.
    """
    m_dim, k_dim = x.shape
    k_dim2, n_dim = w.shape
    assert k_dim == k_dim2 and b_row.shape == (1, n_dim)

    tm = _pick_tile(m_dim, 1024, 16)     # 16: bf16 sublane packing
    tn = _pick_tile(n_dim, 512, 128)
    tk = _pick_tile(k_dim, 512, 128)

    # Make sure the two "parallel" grid axes expose >= 2 tiles so both v7x
    # TensorCores get work (harmless on single-TC v5e/v6e).
    if (m_dim // tm) * (n_dim // tn) == 1:
        if n_dim >= 256:
            tn = _pick_tile(n_dim, max(128, n_dim // 2), 128)
        elif m_dim >= 32:
            tm = _pick_tile(m_dim, max(16, m_dim // 2), 16)

    grid = (m_dim // tm, n_dim // tn, k_dim // tk)

    in_bytes = np.dtype(x.dtype).itemsize
    footprint = (2 * (tm * tk + tk * tn) * in_bytes   # double-buffered x / w
                 + 2 * tm * tn * 4                    # f32 output block
                 + 2 * tn * 4)                        # bias row
    vmem_limit = int(max(32 * 1024 * 1024, min(_vmem_cap_bytes(), 2 * footprint)))

    return pl.pallas_call(
        _matmul_bias_kernel,
        out_shape=jax.ShapeDtypeStruct((m_dim, n_dim), jnp.float32),
        grid=grid,
        in_specs=[
            pl.BlockSpec((tm, tk), lambda m, n, k: (m, k)),   # x block
            pl.BlockSpec((tk, tn), lambda m, n, k: (k, n)),   # weight block
            pl.BlockSpec((1, tn), lambda m, n, k: (0, n)),    # bias row
        ],
        out_specs=pl.BlockSpec((tm, tn), lambda m, n, k: (m, n)),
        compiler_params=pltpu.CompilerParams(
            dimension_semantics=("parallel", "parallel", "arbitrary"),
            vmem_limit_bytes=vmem_limit,
        ),
    )(x, w, b_row)


# ----------------------------------------------------------------------------
# One-time fold of the hypercomplex routing/signs (call ONCE per weight set).
# ----------------------------------------------------------------------------
def fold_hyperlinear_params(wt, b, num_components=8, compute_dtype=jnp.bfloat16):
    """Precompute everything x-independent (weights padded + cast once).

    wt : (nc, ipc, opc) pre-transposed so fc_a(v) = v @ wt[a] + b[a]
    b  : (nc, opc)
    compute_dtype: MXU operand dtype; bf16 (default) is the fast path on all
    generations, pass jnp.float32 for full-precision operands.
    """
    nc = num_components
    ipc, opc = int(wt.shape[-2]), int(wt.shape[-1])
    in_f, out_f = nc * ipc, nc * opc

    sign_np, widx_np = get_comp_tables(nc)
    sign = jnp.asarray(sign_np)

    # Folded block weight (large-batch / compute-bound path):
    #   W_big[j*ipc + p, i*opc + q] = sign[i, j] * wt[i ^ j][p, q]
    blocks = wt[widx_np] * sign[:, :, None, None]              # (i, j, ipc, opc)
    w_big = jnp.transpose(blocks, (1, 2, 0, 3)).reshape(in_f, out_f)

    # Streaming weight (small-batch / weight-BW-bound path): just wt stacked
    # along K -> exactly 1x the original weight bytes.
    w_stack = wt.reshape(in_f, opc)

    # Hoisted effective bias: b_eff[i, :] = sum_j sign[i, j] * b[i ^ j]
    b_eff = (b[widx_np] * sign[:, :, None]).sum(axis=1).astype(jnp.float32)

    # Zero-pad K / N to lane-dense multiples of 128 (done once, here).
    k_pad = _round_up(in_f, 128)
    n_pad_big = _round_up(out_f, 128)
    n_pad_small = _round_up(opc, 128)
    w_big = jnp.pad(w_big, ((0, k_pad - in_f), (0, n_pad_big - out_f)))
    w_stack = jnp.pad(w_stack, ((0, k_pad - in_f), (0, n_pad_small - opc)))

    return dict(
        num_components=nc,
        in_features=in_f,
        out_features=out_f,
        w_big=w_big.astype(compute_dtype),
        w_stack=w_stack.astype(compute_dtype),
        b_eff=b_eff,                                  # (nc, opc)   f32
        b_eff_row=b_eff.reshape(1, out_f),            # (1, out_f)  f32
    )


# ----------------------------------------------------------------------------
# Per-call apply functions (jit'ed; weights are already folded/padded/cast).
# ----------------------------------------------------------------------------
@jax.jit
def _apply_folded(x, w_big, b_eff_row):
    """y = x @ W_big + b_eff via one long-K, lane-dense MXU matmul."""
    batch, in_f = x.shape
    k_pad, n_pad = w_big.shape
    out_f = b_eff_row.shape[1]

    xq = x.astype(w_big.dtype)
    if k_pad != in_f:
        xq = jnp.pad(xq, ((0, 0), (0, k_pad - in_f)))
    b_pad = b_eff_row
    if n_pad != out_f:
        b_pad = jnp.pad(b_eff_row, ((0, 0), (0, n_pad - out_f)))

    y = _pallas_matmul_bias(xq, w_big, b_pad)
    return y[:, :out_f]


@jax.jit
def _apply_streaming(x, w_stack, b_eff):
    """Small-batch path: y_i = sum_a sign[i, i^a] * x_{i^a} @ W_a.

    The XOR permutation + signs are folded into a replicated activation matrix
    X_perm (nc*B, in_f); the kernel then streams each original W_a exactly
    once (1x weight bytes instead of the nc-x inflated W_big).
    """
    batch, in_f = x.shape
    nc, opc = b_eff.shape
    ipc = in_f // nc
    k_pad, n_pad = w_stack.shape

    sign_np, _ = get_comp_tables(nc)
    perm = np.array([[i ^ a for a in range(nc)] for i in range(nc)], np.int32)
    s_ia = np.array([[sign_np[i, i ^ a] for a in range(nc)] for i in range(nc)],
                    np.float32)

    x3 = x.reshape(batch, nc, ipc)
    xg = x3[:, perm, :] * jnp.asarray(s_ia)[None, :, :, None]   # (B, i, a, ipc)
    x_perm = jnp.transpose(xg, (1, 0, 2, 3)).reshape(nc * batch, in_f)
    x_perm = x_perm.astype(w_stack.dtype)
    if k_pad != in_f:
        x_perm = jnp.pad(x_perm, ((0, 0), (0, k_pad - in_f)))

    zero_bias = jnp.zeros((1, n_pad), jnp.float32)
    y = _pallas_matmul_bias(x_perm, w_stack, zero_bias)          # (nc*B, n_pad)
    y = y[:, :opc].reshape(nc, batch, opc) + b_eff[:, None, :]
    return jnp.transpose(y, (1, 0, 2)).reshape(batch, nc * opc)


def hyperlinear_forward(x, params, use_streaming=None):
    """HyperLinear forward given params from fold_hyperlinear_params()."""
    nc = params["num_components"]
    out_f = params["out_features"]
    batch = x.shape[0]
    if use_streaming is None:
        # Rough HBM-byte heuristic: streaming replicates activations nc-x,
        # the folded path replicates weights nc-x.
        use_streaming = (nc * batch + params["w_stack"].shape[1]) < out_f
    if use_streaming:
        return _apply_streaming(x, params["w_stack"], params["b_eff"])
    return _apply_folded(x, params["w_big"], params["b_eff_row"])


# ----------------------------------------------------------------------------
# Pure-JAX reference (same math as the module's double loop).
# ----------------------------------------------------------------------------
def hyperlinear_ref(x, wt, b, num_components):
    batch, in_f = x.shape
    ipc = in_f // num_components
    opc = wt.shape[-1]
    sign_mat, widx_mat = get_comp_tables(num_components)
    xs = [x[:, j * ipc:(j + 1) * ipc] for j in range(num_components)]
    ys = []
    for i in range(num_components):
        acc = jnp.zeros((batch, opc), jnp.float32)
        for j in range(num_components):
            a = int(widx_mat[i, j])
            s = float(sign_mat[i, j])
            acc = acc + s * (xs[j] @ wt[a] + b[a])
        ys.append(acc)
    return jnp.concatenate(ys, axis=1)


if __name__ == "__main__":
    num_components = 8
    root = jax.random.PRNGKey(0)

    def make_inputs(key, batch, in_features, out_features):
        ipc = in_features // num_components
        opc = out_features // num_components
        kx, kw, kb = jax.random.split(key, 3)
        x = jax.random.normal(kx, (batch, in_features), dtype=jnp.float32)
        bound = 1.0 / np.sqrt(ipc)
        wt = jax.random.uniform(kw, (num_components, ipc, opc),
                                minval=-bound, maxval=bound, dtype=jnp.float32)
        b = jax.random.uniform(kb, (num_components, opc),
                               minval=-bound, maxval=bound, dtype=jnp.float32)
        return x, wt, b

    k1, k2, k3 = jax.random.split(root, 3)

    # ---- config A: lane-aligned small shape (batch=16, 256 -> 256) ----
    xa, wta, ba = make_inputs(k1, batch=16, in_features=256, out_features=256)
    ref_a = hyperlinear_ref(xa, wta, ba, num_components)

    params_a_f32 = fold_hyperlinear_params(wta, ba, num_components,
                                           compute_dtype=jnp.float32)
    out = jax.block_until_ready(
        hyperlinear_forward(xa, params_a_f32, use_streaming=False))
    assert out.shape == ref_a.shape
    assert jnp.allclose(out, ref_a, atol=1e-3, rtol=1e-3), "folded f32 mismatch"
    out = jax.block_until_ready(
        hyperlinear_forward(xa, params_a_f32, use_streaming=True))
    assert jnp.allclose(out, ref_a, atol=1e-3, rtol=1e-3), "streaming f32 mismatch"

    params_a_bf16 = fold_hyperlinear_params(wta, ba, num_components)  # bf16 default
    out = jax.block_until_ready(hyperlinear_forward(xa, params_a_bf16))  # auto path
    assert jnp.allclose(out, ref_a, atol=5e-2, rtol=5e-2), "bf16 auto mismatch"
    out = jax.block_until_ready(
        hyperlinear_forward(xa, params_a_bf16, use_streaming=False))
    assert jnp.allclose(out, ref_a, atol=5e-2, rtol=5e-2), "bf16 folded mismatch"
    out = jax.block_until_ready(
        hyperlinear_forward(xa, params_a_bf16, use_streaming=True))
    assert jnp.allclose(out, ref_a, atol=5e-2, rtol=5e-2), "bf16 streaming mismatch"

    # ---- config B: tiny misaligned shape (ipc=opc=8) -> exercises 128-pad ----
    xb, wtb, bb = make_inputs(k2, batch=8, in_features=64, out_features=64)
    ref_b = hyperlinear_ref(xb, wtb, bb, num_components)
    params_b = fold_hyperlinear_params(wtb, bb, num_components,
                                       compute_dtype=jnp.float32)
    out = jax.block_until_ready(
        hyperlinear_forward(xb, params_b, use_streaming=False))
    assert jnp.allclose(out, ref_b, atol=1e-3, rtol=1e-3), "padded folded mismatch"
    out = jax.block_until_ready(
        hyperlinear_forward(xb, params_b, use_streaming=True))
    assert jnp.allclose(out, ref_b, atol=1e-3, rtol=1e-3), "padded streaming mismatch"

    # ---- config C: multi-K grid + two-tile parallel split (bf16 fast path) ----
    xc, wtc, bc = make_inputs(k3, batch=32, in_features=1024, out_features=512)
    ref_c = hyperlinear_ref(xc, wtc, bc, num_components)
    params_c = fold_hyperlinear_params(wtc, bc, num_components)       # bf16 default
    out = jax.block_until_ready(
        hyperlinear_forward(xc, params_c, use_streaming=False))
    assert jnp.allclose(out, ref_c, atol=1e-1, rtol=1e-1), "bf16 K-accum folded mismatch"
    out = jax.block_until_ready(
        hyperlinear_forward(xc, params_c, use_streaming=True))
    assert jnp.allclose(out, ref_c, atol=1e-1, rtol=1e-1), "bf16 K-accum streaming mismatch"

    print("KERNEL_OK")
</pallas_src>

<mosaic_0001>
module attributes {stable_mosaic.version = 11 : i64} {
  func.func @_matmul_bias_kernel(%arg0: i32, %arg1: i32, %arg2: i32, %arg3: memref<16x256xf32, #tpu.memory_space<vmem>>, %arg4: memref<256x128xf32, #tpu.memory_space<vmem>>, %arg5: memref<1x128xf32, #tpu.memory_space<vmem>>, %arg6: memref<16x128xf32, #tpu.memory_space<vmem>>) attributes {dimension_semantics = [#tpu.dimension_semantics<parallel>, #tpu.dimension_semantics<parallel>, #tpu.dimension_semantics<arbitrary>], iteration_bounds = array<i64: 1, 2, 1>, scalar_prefetch = 0 : i64, scratch_operands = 0 : i64, tpu.core_type = #tpu.core_type<tc>, window_params = [{transform_indices = @transform_0, window_bounds = array<i64: 16, 256>}, {transform_indices = @transform_1, window_bounds = array<i64: 256, 128>}, {transform_indices = @transform_2, window_bounds = array<i64: 1, 128>}, {transform_indices = @transform_3, window_bounds = array<i64: 16, 128>}]} {
    %c0 = arith.constant 0 : index
    %c0_0 = arith.constant 0 : index
    %0 = vector.load %arg3[%c0, %c0_0] : memref<16x256xf32, #tpu.memory_space<vmem>>, vector<16x256xf32>
    %c0_1 = arith.constant 0 : index
    %c0_2 = arith.constant 0 : index
    %1 = vector.load %arg4[%c0_1, %c0_2] : memref<256x128xf32, #tpu.memory_space<vmem>>, vector<256x128xf32>
    %cst = arith.constant dense<0.000000e+00> : vector<16x128xf32>
    %2 = tpu.matmul %0, %1, %cst {dimension_numbers = #tpu.dot_dimension_numbers<[1], [0], [0], [1], [0, 0, 1, 1], [], []>} : vector<16x256xf32>, vector<256x128xf32>, vector<16x128xf32> -> vector<16x128xf32>
    %c0_i32 = arith.constant 0 : i32
    %3 = arith.cmpi eq, %arg2, %c0_i32 : i32
    %4 = arith.extui %3 : i1 to i32
    %c0_i32_3 = arith.constant 0 : i32
    %5 = arith.cmpi ne, %4, %c0_i32_3 : i32
    scf.if %5 {
      %c0_8 = arith.constant 0 : index
      %c0_9 = arith.constant 0 : index
      %12 = vector.load %arg6[%c0_8, %c0_9] : memref<16x128xf32, #tpu.memory_space<vmem>>, vector<16x128xf32>
      tpu.vector_store %arg6[%c0_8, %c0_9], %2 {strides = array<i32>} : memref<16x128xf32, #tpu.memory_space<vmem>>, vector<16x128xf32>,
    } else {
    }
    %c0_i32_4 = arith.constant 0 : i32
    %6 = arith.cmpi ne, %arg2, %c0_i32_4 : i32
    %7 = arith.extui %6 : i1 to i32
    %c0_i32_5 = arith.constant 0 : i32
    %8 = arith.cmpi ne, %7, %c0_i32_5 : i32
    scf.if %8 {
      %c0_8 = arith.constant 0 : index
      %c0_9 = arith.constant 0 : index
      %12 = vector.load %arg6[%c0_8, %c0_9] : memref<16x128xf32, #tpu.memory_space<vmem>>, vector<16x128xf32>
      %13 = arith.addf %12, %2 : vector<16x128xf32>
      %c0_10 = arith.constant 0 : index
      %c0_11 = arith.constant 0 : index
      %14 = vector.load %arg6[%c0_10, %c0_11] : memref<16x128xf32, #tpu.memory_space<vmem>>, vector<16x128xf32>
      tpu.vector_store %arg6[%c0_10, %c0_11], %13 {strides = array<i32>} : memref<16x128xf32, #tpu.memory_space<vmem>>, vector<16x128xf32>,
    } else {
    }
    %c0_i32_6 = arith.constant 0 : i32
    %9 = arith.cmpi eq, %arg2, %c0_i32_6 : i32
    %10 = arith.extui %9 : i1 to i32
    %c0_i32_7 = arith.constant 0 : i32
    %11 = arith.cmpi ne, %10, %c0_i32_7 : i32
    scf.if %11 {
      %c0_8 = arith.constant 0 : index
      %c0_9 = arith.constant 0 : index
      %12 = vector.load %arg6[%c0_8, %c0_9] : memref<16x128xf32, #tpu.memory_space<vmem>>, vector<16x128xf32>
      %c0_10 = arith.constant 0 : index
      %c0_11 = arith.constant 0 : index
      %13 = vector.load %arg5[%c0_10, %c0_11] : memref<1x128xf32, #tpu.memory_space<vmem>>, vector<1x128xf32>
      %14 = vector.broadcast %13 : vector<1x128xf32> to vector<16x128xf32>
      %15 = arith.addf %12, %14 : vector<16x128xf32>
      %c0_12 = arith.constant 0 : index
      %c0_13 = arith.constant 0 : index
      %16 = vector.load %arg6[%c0_12, %c0_13] : memref<16x128xf32, #tpu.memory_space<vmem>>, vector<16x128xf32>
      tpu.vector_store %arg6[%c0_12, %c0_13], %15 {strides = array<i32>} : memref<16x128xf32, #tpu.memory_space<vmem>>, vector<16x128xf32>,
    } else {
    }
    return
  }
  func.func @transform_0(%arg0: i32, %arg1: i32, %arg2: i32) -> (i32, i32) {
    %c0_i32 = arith.constant 0 : i32
    return %arg0, %arg2 : i32, i32
  }
  func.func @transform_1(%arg0: i32, %arg1: i32, %arg2: i32) -> (i32, i32) {
    %c0_i32 = arith.constant 0 : i32
    return %arg2, %arg1 : i32, i32
  }
  func.func @transform_2(%arg0: i32, %arg1: i32, %arg2: i32) -> (i32, i32) {
    %c0_i32 = arith.constant 0 : i32
    %c0_i32_0 = arith.constant 0 : i32
    return %c0_i32, %arg1 : i32, i32
  }
  func.func @transform_3(%arg0: i32, %arg1: i32, %arg2: i32) -> (i32, i32) {
    %c0_i32 = arith.constant 0 : i32
    return %arg0, %arg1 : i32, i32
  }
}

</mosaic_0001>

<bundles_post_ra>
// kernel: _apply_folded.1
= control target key start
LH: loop header
LB: loop body
LE: loop exit
PB: predicated region body
PF: predicated region fallthrough
CT: control target
= control target key end

     0   :  { %8 = vsyncpa [#allocation3], 0  ;;  %s1154_s0 = inlined_call_operand.hbm [shape: f32[16,256], index: 0, kind: input, shape index: {}]   ;;  %s1155_s1 = inlined_call_operand.hbm [shape: f32[256,256], index: 1, kind: input, shape index: {}]   ;;  %s1156_s2 = inlined_call_operand.vmem [shape: f32[1,256], index: 2, kind: input, shape index: {}]   ;;  %s1157_s3 = inlined_call_operand.hbm [shape: f32[16,256], index: 3, kind: output, shape index: {}]  }
   0x1   :  { %9 = vsyncpa [#allocation6], 0 }
   0x2   :  { %11 = vsyncpa [#allocation6 + $0x1], 0 }
   0x3   :  { %12 = vsyncpa [#allocation4], 0 }
   0x4   :  { %14 = vsyncpa [#allocation4 + $0x1], 0  ;;  %s891_s12 = smov 0   ;;  %s893_s13 = smov 0  }
   0x5   :  { %s895_s14 = smov 0   ;;  %s897_s15 = smov 0  }
   0x6   :  { %s899_s16 = smov 0   ;;  %s901_s17 = smov 0  }
   0x7 LB: > { %s533_s18 = sadd.s32 4294967295, %s859_s17   ;;  %s534_s19 = sadd.s32 4294967294, %s859_s17   ;;  %s859_s17 = sphi %s901_s17, %s20_s17   ;;  %s855_s16 = sphi %s899_s16, %s1183_s16   ;;  %s851_s15 = sphi %s897_s15, %s1182_s15   ;;  %s847_s14 = sphi %s895_s14, %s1181_s14   ;;  %s843_s13 = sphi %s893_s13, %s1180_s13   ;;  %s839_s12 = sphi %s891_s12, %s1179_s12  }
   0x8   : > { %p83_p0 = scmp.ne.s32.totalorder %s847_s14, %s843_s13  ;;  %p84_p1 = scmp.eq.s32.totalorder %s859_s17, 0 }
   0x9   : > { %p89_p2 = scmp.ne.s32.totalorder %s843_s13, %s839_s12  ;;  %p928_p3 = scmp.eq.s32.totalorder %s533_s18, 0 }
   0xa   : > { %p932_p4 = por %p84_p1, %p83_p0  ;;  %p141_p5 = scmp.eq.s32.totalorder %s533_s18, 1 }
   0xb   : > { %s1164_s20 = scalar_select %p928_p3, 1, 0 }
   0xc   : > { %p938_p6 = por %p928_p3, %p89_p2  ;;  %p147_p7 = scmp.eq.s32.totalorder %s534_s19, 1 }
   0xd   : > { %p942_p8 = por %p141_p5, %p83_p0  ;;  %p535_p9 = scmp.ge.s32.totalorder %s859_s17, 1 }
   0xe   : > { %s1166_s22 = scalar_select %p938_p6, 1, 0 }
   0xf   : > { %s1167_s23 = scalar_select %p942_p8, 1, 0 }
  0x10   : > { %p947_p10 = por %p147_p7, %p89_p2  ;;  %p154_p11 = scmp.lt.s32.totalorder %s859_s17, 3 }
  0x11   : > { %s861_s26 = smov [#allocation2]   ;;  %p656_p1 = scmp.lt.s32.totalorder %s859_s17, 2 }
  0x12   : > { %s1168_s24 = scalar_select %p947_p10, 1, 0 }
  0x13   : > { %p952_p12 = pnand %p535_p9, %p154_p11  ;;  %s172_s27 = sshll.u32 %s861_s26, 4  ;;  %s956_s27 = int_to_ptr.vmem [resolvable:$true] %s172_s27 }
  0x14   : > { %p970_p2 = pnand %p656_p1, %p932_p4  ;;  %s35_s30 = sadd.s32 1, %s855_s16 }
  0x15   : > { %s1169_s25 = scalar_select %p952_p12, 1, 0 }
  0x16   : > { %p643_p13 = pneg %p952_p12  ;;  %s715_s6 = scalar_lea.hbm %s1154_s0, 512 }
  0x17   : > { %s1171_s29 = scalar_select %p970_p2, 1, 0 }
  0x18   : > { %p964_p5 = pnand %p643_p13, %p928_p3  ;;  %p716_p7 = scmp.ne.s32.totalorder %s1154_s0, %s715_s6 }
  0x19   : > { %p722_p4 = scmp.lt.u32.totalorder %s715_s6, %s1154_s0 }
  0x1a   : > { %p717_p9 = pneg %p964_p5 }
  0x1c   : > { %p718_p11 = pnand %p717_p9, %p716_p7 }
  0x1e   : > { %p719_p13 = pneg %p718_p11 }
  0x20   : > { %p724_p1 = pnand %p722_p4, %p719_p13 }
  0x22   : > { %727 = shalt.err (!%p724_p1)
}
  0x23   : > { %s728_s11 = scalar_lea.vmem %s956_s27, 512  ;;  %p736_p6 = scmp.lt.s32.totalorder %s956_s27, %s956_s27 }
  0x24   : > { %p729_p0 = scmp.ne.s32.totalorder %s956_s27, %s728_s11  ;;  %p737_p3 = scmp.lt.s32.totalorder %s728_s11, %s728_s11 }
  0x26   : > { %p731_p10 = pnand %p729_p0, %p717_p9  ;;  %p738_p12 = por %p737_p3, %p736_p6 }
  0x28   : > { %p732_p8 = pneg %p731_p10 }
  0x2a   : > { %p739_p2 = pnand %p738_p12, %p732_p8 }
  0x2c   : > { %742 = shalt.err (!%p739_p2)
}
  0x2d   : > { %s862_s18 = smov 256   ;;  %s863_s19 = smov 16  }
  0x2e   : > { %646 = dma.hbm_to_vmem [thread:$0]  (!%p964_p5), %s1154_s0, 512, %s956_s27, [#allocation3], %s862_s18, %s862_s18, %s863_s19  }
  0x2f   : > { %p37_p10 = scmp.ge.s32.totalorder %s35_s30, 2  ;;  %s76_s4 = sadd.s32 1, %s847_s14 }
  0x30   : > { %s186_s5 = sand.u32 1, %s847_s14   ;;  %s539_s8 = sshll.u32 %s855_s16, 7 }
  0x31   : > { %s1185_s30 = smov (%p37_p10, %s35_s30), 0  ;;  %s538_s6 = sshll.u32 %s186_s5, 8 }
  0x32   : > { %s72_s7 = ssub.s32 %s855_s16, %s1185_s30  ;;  %s1008_s10 = scalar_lea.hbm %s1155_s1, %s539_s8 }
  0x33   : > { %p74_p3 = scmp.eq.s32.totalorder %s72_s7, 0  ;;  %s190_s27 = scalar_lea.vmem [#allocation5], %s538_s6 }
  0x34   : > { %s199_s11 = sshll.u32 %s190_s27, 4  ;;  %s1015_s21 = scalar_lea.sflag [#allocation6], %s186_s5  ;;  %s1013_s11 = int_to_ptr.vmem [resolvable:$true] %s199_s11 }
  0x35   : > { %s1011_s19 = scalar_select %p74_p3, %s847_s14, %s76_s4  }
  0x36   : > { %s743_s26 = scalar_lea.hbm %s1008_s10, 4096  ;;  %p1172_p8 = scmp.ne.s32.totalorder %s1171_s29, 0 }
  0x37   : > { %p744_p6 = scmp.ne.s32.totalorder %s1008_s10, %s743_s26  ;;  %s748_s9 = scalar_lea.hbm %s1155_s1, 8192 }
  0x38   : > { %p745_p12 = pneg %p1172_p8  ;;  %p749_p2 = scmp.lt.u32.totalorder %s1008_s10, %s1155_s1 }
  0x39   : > { %p750_p7 = scmp.lt.u32.totalorder %s748_s9, %s743_s26  ;;  %p752_p11 = scmp.lt.u32.totalorder %s743_s26, %s1008_s10 }
  0x3a   : > { %p746_p0 = pnand %p745_p12, %p744_p6 }
  0x3b   : > { %p751_p9 = por %p750_p7, %p749_p2 }
  0x3c   : > { %p747_p5 = pneg %p746_p0 }
  0x3d   : > { %p753_p13 = por %p752_p11, %p751_p9 }
  0x3f   : > { %p754_p4 = pnand %p753_p13, %p747_p5 }
  0x41   : > { %757 = shalt.err (!%p754_p4)
}
  0x42   : > { %s758_s4 = scalar_lea.vmem %s1013_s11, 4096  ;;  %s864_s5 = smov [#allocation5]  }
  0x43   : > { %p759_p1 = scmp.ne.s32.totalorder %s1013_s11, %s758_s4  ;;  %s763_s27 = sshll.u32 %s864_s5, 4  ;;  %s764_s27 = int_to_ptr.vmem [resolvable:$false] %s763_s27 }
  0x44   : > { %s765_s7 = scalar_lea.vmem %s764_s27, 8192  ;;  %p766_p6 = scmp.lt.s32.totalorder %s1013_s11, %s764_s27 }
  0x45   : > { %p761_p10 = pnand %p759_p1, %p745_p12  ;;  %p767_p0 = scmp.lt.s32.totalorder %s765_s7, %s758_s4 }
  0x47   : > { %p762_p3 = pneg %p761_p10  ;;  %p768_p2 = por %p767_p0, %p766_p6 }
  0x49   : > { %p769_p7 = pnand %p768_p2, %p762_p3 }
  0x4b   : > { %772 = shalt.err (!%p769_p7)
}
  0x4c   : > { %s865_s26 = smov 128   ;;  %s866_s8 = smov 8  }
  0x4d   : > { %650 = dma.hbm_to_vmem [thread:$0]  (!%p1172_p8), %s1008_s10, 4096, %s1013_s11, %s1015_s21, %s862_s18, %s865_s26, %s866_s8  }
  0x4e   : > { %p1173_p12 = scmp.ne.s32.totalorder %s1169_s25, 0 }
  0x4f   : > { %p1174_p5 = scmp.ne.s32.totalorder (!%p1173_p12), %s1164_s20, 0 }
  0x50   : > { %217 = sbr.rel (%p1173_p12) target bundleno = 360 (0x168), region = 32 }
  0x57   : > { %826 = dma.done.wait (%p1174_p5), [#allocation3], 512  }
  0x58   : > { %828 = vsyncadd (%p1174_p5), [#allocation3], 4294966784  ;;  %s1051_s9 = sand.u32 1, %s843_s13   ;;  %p1175_p8 = scmp.ne.s32.totalorder %s1166_s22, 0 }
  0x59   : > { %s542_s6 = sshll.u32 %s1051_s9, 8  ;;  %s224_s28 = scalar_lea.sflag [#allocation6], %s1051_s9 }
  0x5a   : > { %s1055_s29 = scalar_lea.vmem [#allocation5], %s542_s6 }
  0x5b   : > { %830 = dma.done.wait (%p1175_p8), %s224_s28, 4096  }
  0x5c   : > { %832 = vsyncadd (%p1175_p8), %s224_s28, 4294963200  ;;  %v280_v0 = vld [vmem:[%s1055_s29 + $0x80] sm:$0xff]  ;;  %v281_v1 = vld [vmem:[%s1055_s29 + $0x88] sm:$0xff]  ;;  %p256_p9 = scmp.lt.s32.totalorder %s851_s15, 1  ;;  %s543_s20 = sshll.u32 %s1051_s9, 4 }
  0x5d   : > { %v264_v2 = vld [vmem:[%s1055_s29] sm:$0xff]  ;;  %v587_v3 = vpack.c.bf16 %v281_v1, %v280_v0  ;;  %v265_v4 = vld [vmem:[%s1055_s29 + $0x8] sm:$0xff]  ;;  %v282_v5 = vld [vmem:[%s1055_s29 + $0x90] sm:$0xff]  ;;  %s546_s11 = sshll.u32 %s851_s15, 7  ;;  %s252_s21 = scalar_lea.vmem [#allocation7], %s543_s20 }
  0x5e   : > { %v283_v6 = vld [vmem:[%s1055_s29 + $0x98] sm:$0xff]  ;;  %v589_v7 = vpack.c.bf16 %v265_v4, %v264_v2  ;;  %v266_v9 = vld [vmem:[%s1055_s29 + $0x10] sm:$0xff]  ;;  %v284_v11 = vld [vmem:[%s1055_s29 + $0xa0] sm:$0xff]  ;;  %s257_s22 = scalar_select %p256_p9, %s851_s15, 1 }
  0x5f   : > { %v591_v8 = vpack.c.bf16 %v283_v6, %v282_v5  ;;  %v267_v10 = vld [vmem:[%s1055_s29 + $0x18] sm:$0xff]  ;;  %588 = vmatprep.subr.bf16.mxu0 %v587_v3  ;;  %619 = vmatprep.subr.bf16.mxu1 %v587_v3  ;;  %v285_v12 = vld [vmem:[%s1055_s29 + $0xa8] sm:$0xff]  ;;  %v268_v15 = vld [vmem:[%s1055_s29 + $0x20] sm:$0xff]  ;;  %s419_s4 = sshll.u32 %s252_s21, 4  ;;  %s1103_s7 = scalar_lea.hbm %s1157_s3, %s546_s11  ;;  %s1105_s4 = int_to_ptr.vmem [resolvable:$true] %s419_s4 }
  0x60   : > { %590 = vmatpush3.bf16.msra.mxu0 %v589_v7  ;;  %627 = vmatpush3.bf16.msra.mxu1 %v589_v7  ;;  %v593_v13 = vpack.c.bf16 %v267_v10, %v266_v9  ;;  %v595_v14 = vpack.c.bf16 %v285_v12, %v284_v11  ;;  %v269_v16 = vld [vmem:[%s1055_s29 + $0x28] sm:$0xff]  ;;  %v286_v17 = vld [vmem:[%s1055_s29 + $0xb0] sm:$0xff]  ;;  %v287_v18 = vld [vmem:[%s1055_s29 + $0xb8] sm:$0xff]  ;;  %s258_s10 = scalar_lea.vmem %s1156_s2, %s257_s22  ;;  %s404_s15 = scalar_lea.sflag [#allocation4], %s1051_s9 }
  0x61   : > { %592 = vmatprep.subr.bf16.mxu0 %v591_v8  ;;  %620 = vmatprep.subr.bf16.mxu1 %v591_v8  ;;  %v597_v19 = vpack.c.bf16 %v269_v16, %v268_v15  ;;  %v599_v20 = vpack.c.bf16 %v287_v18, %v286_v17  ;;  %v270_v21 = vld [vmem:[%s1055_s29 + $0x30] sm:$0xff]  ;;  %v271_v22 = vld [vmem:[%s1055_s29 + $0x38] sm:$0xff]  ;;  %v288_v23 = vld [vmem:[%s1055_s29 + $0xc0] sm:$0xff]  ;;  %s773_s26 = scalar_lea.vmem %s1105_s4, 256  ;;  %p1176_p13 = scmp.ne.s32.totalorder %s1167_s23, 0 }
  0x62   : > { %v289_v24 = vld [vmem:[%s1055_s29 + $0xc8] sm:$0xff]  ;;  %v263_v26 = vld [vmem:[#allocation2 + $0x18] sm:$0xff]  ;;  %v601_v27 = vpack.c.bf16 %v271_v22, %v270_v21  ;;  %v272_v29 = vld [vmem:[%s1055_s29 + $0x40] sm:$0xff]  ;;  %p774_p11 = scmp.ne.s32.totalorder %s1105_s4, %s773_s26  ;;  %s867_s8 = smov [#allocation7]  }
  0x63   : > { %v261_v25 = vld [vmem:[#allocation2 + $0x8] sm:$0xff]  ;;  %v603_v28 = vpack.c.bf16 %v289_v24, %v288_v23  ;;  %v290_v31 = vld [vmem:[%s1055_s29 + $0xd0] sm:$0xff]  ;;  %v291_v32 = vld [vmem:[%s1055_s29 + $0xd8] sm:$0xff]  ;;  %365 = vmatprep.mubr.f32.mxu1 %v263_v26  ;;  %s777_s6 = sshll.u32 %s867_s8, 4  ;;  %s778_s6 = int_to_ptr.vmem [resolvable:$false] %s777_s6 }
  0x64   : > { %594 = vmatpush3.bf16.msra.mxu0 %v593_v13  ;;  %628 = vmatpush3.bf16.msra.mxu1 %v593_v13  ;;  %v273_v30 = vld [vmem:[%s1055_s29 + $0x48] sm:$0xff]  ;;  %v607_v34 = vpack.c.bf16 %v291_v32, %v290_v31  ;;  %v274_v35 = vld [vmem:[%s1055_s29 + $0x50] sm:$0xff]  ;;  %v275_v36 = vld [vmem:[%s1055_s29 + $0x58] sm:$0xff]  ;;  %p775_p4 = pnand %p774_p11, %p1176_p13  ;;  %s779_s28 = scalar_lea.vmem %s778_s6, 512 }
  0x65   : > { %596 = vmatprep.subr.bf16.mxu0 %v595_v14  ;;  %621 = vmatprep.subr.bf16.mxu1 %v595_v14  ;;  %v605_v33 = vpack.c.bf16 %v273_v30, %v272_v29  ;;  %v292_v37 = vld [vmem:[%s1055_s29 + $0xe0] sm:$0xff]  ;;  %v293_v38 = vld [vmem:[%s1055_s29 + $0xe8] sm:$0xff]  ;;  %v609_v39 = vpack.c.bf16 %v275_v36, %v274_v35  ;;  %v294_v43 = vld [vmem:[%s1055_s29 + $0xf0] sm:$0xff]  ;;  %p780_p10 = scmp.lt.s32.totalorder %s1105_s4, %s778_s6  ;;  %p781_p3 = scmp.lt.s32.totalorder %s779_s28, %s773_s26 }
  0x66   : > { %360 = vmatprep.mubr.f32.mxu0 %v261_v25  ;;  %v611_v40 = vpack.c.bf16 %v293_v38, %v292_v37  ;;  %v276_v41 = vld [vmem:[%s1055_s29 + $0x60] sm:$0xff]  ;;  %v277_v42 = vld [vmem:[%s1055_s29 + $0x68] sm:$0xff]  ;;  %v295_v44 = vld [vmem:[%s1055_s29 + $0xf8] sm:$0xff]  ;;  %p776_p1 = pneg %p775_p4 }
  0x67   : > { %v613_v45 = vpack.c.bf16 %v277_v42, %v276_v41  ;;  %v615_v46 = vpack.c.bf16 %v295_v44, %v294_v43  ;;  %v278_v47 = vld [vmem:[%s1055_s29 + $0x70] sm:$0xff]  ;;  %v279_v48 = vld [vmem:[%s1055_s29 + $0x78] sm:$0xff]  ;;  %v260_v50 = vld [vmem:[#allocation2] sm:$0xff]  ;;  %p782_p6 = por %p781_p3, %p780_p10 }
  0x68   : > { %598 = vmatpush3.bf16.msra.mxu0 %v597_v19  ;;  %629 = vmatpush3.bf16.msra.mxu1 %v597_v19  ;;  %v617_v49 = vpack.c.bf16 %v279_v48, %v278_v47  ;;  %v262_v51 = vld [vmem:[#allocation2 + $0x10] sm:$0xff]  ;;  %v544_v55 = vld [vmem:[%s258_s10] ss:$0 sm:$0xff] }
  0x69   : > { %600 = vmatprep.subr.bf16.mxu0 %v599_v20  ;;  %622 = vmatprep.subr.bf16.mxu1 %v599_v20  ;;  %p783_p0 = pnand %p782_p6, %p776_p1 }
  0x6c   : > { %602 = vmatpush3.bf16.msra.mxu0 %v601_v27  ;;  %630 = vmatpush3.bf16.msra.mxu1 %v601_v27 }
  0x6d   : > { %604 = vmatprep.subr.bf16.mxu0 %v603_v28  ;;  %623 = vmatprep.subr.bf16.mxu1 %v603_v28 }
  0x70   : > { %606 = vmatpush3.bf16.msra.mxu0 %v605_v33  ;;  %631 = vmatpush3.bf16.msra.mxu1 %v605_v33 }
  0x71   : > { %608 = vmatprep.subr.bf16.mxu0 %v607_v34  ;;  %624 = vmatprep.subr.bf16.mxu1 %v607_v34 }
  0x74   : > { %610 = vmatpush3.bf16.msra.mxu0 %v609_v39  ;;  %632 = vmatpush3.bf16.msra.mxu1 %v609_v39 }
  0x75   : > { %612 = vmatprep.subr.bf16.mxu0 %v611_v40  ;;  %625 = vmatprep.subr.bf16.mxu1 %v611_v40 }
  0x78   : > { %614 = vmatpush3.bf16.msra.mxu0 %v613_v45  ;;  %633 = vmatpush3.bf16.msra.mxu1 %v613_v45 }
  0x79   : > { %616 = vmatprep.subr.bf16.mxu0 %v615_v46  ;;  %626 = vmatprep.subr.bf16.mxu1 %v615_v46 }
  0x7c   : > { %618 = vmatpush3.bf16.msra.mxu0 %v617_v49  ;;  %634 = vmatpush3.bf16.msra.mxu1 %v617_v49 }
  0x7f   : > { %361 = vmatmul.mubr.f32.vlgmr.msra.gmra.mrb[0].mxu0 %v260_v50  ;;  %366 = vmatmul.mubr.f32.vlgmr.msra.gmra.mrb[0].mxu1 %v262_v51 }
 0x152   : > { %v581_v52 = vpop.f32.mrb[0].mxu0  ;;  %v584_v53 = vpop.f32.mrb[0].mxu1 }
 0x153   : > { %v582_v54 = vpop.f32.mrb[1].mxu0  ;;  %v585_v56 = vpop.f32.mrb[1].mxu1 }
 0x154   : > { %v583_v57 = vadd.f32 %v582_v54, %v581_v52  ;;  %v586_v58 = vadd.f32 %v585_v56, %v584_v53 }
 0x156   : > { %v399_v59 = vadd.f32 %v583_v57, %v544_v55  ;;  %v400_v60 = vadd.f32 %v586_v58, %v544_v55 }
 0x158   : > { %401 = vst [vmem:[%s252_s21] sm:$0xff] %v399_v59  ;;  %402 = vst [vmem:[%s252_s21 + $0x8] sm:$0xff] %v400_v60 }
 0x159   : > { %786 = shalt.err (!%p783_p0)
}
 0x15a   : > { %s787_s29 = scalar_lea.hbm %s1103_s7, 256  ;;  %s791_s25 = scalar_lea.hbm %s1157_s3, 512 }
 0x15b   : > { %p788_p2 = scmp.ne.s32.totalorder %s1103_s7, %s787_s29  ;;  %p792_p5 = scmp.lt.u32.totalorder %s1103_s7, %s1157_s3 }
 0x15c   : > { %p793_p8 = scmp.lt.u32.totalorder %s791_s25, %s787_s29  ;;  %p795_p11 = scmp.lt.u32.totalorder %s787_s29, %s1103_s7 }
 0x15d   : > { %p789_p7 = pnand %p788_p2, %p1176_p13 }
 0x15e   : > { %p794_p9 = por %p793_p8, %p792_p5 }
 0x15f   : > { %p790_p12 = pneg %p789_p7 }
 0x160   : > { %p796_p4 = por %p795_p11, %p794_p9 }
 0x162   : > { %p797_p1 = pnand %p796_p4, %p790_p12 }
 0x164   : > { %800 = shalt.err (!%p797_p1)
}
 0x165   : > { %s868_s11 = smov 128   ;;  %s869_s21 = smov 256  }
 0x166   : > { %s870_s5 = smov 8  }
 0x167   : > { %641 = dma.vmem_to_hbm [thread:$0]  (%p1176_p13), %s1105_s4, 256, %s1103_s7, %s404_s15, %s868_s11, %s869_s21, %s870_s5  }
 0x168 PF: > { %s434_s27 = sand.u32 1, %s839_s12   ;;  %p1177_p10 = scmp.ne.s32.totalorder %s1168_s24, 0 }
 0x169   : > { %p1178_p3 = scmp.ge.s32.totalorder %s859_s17, 2  ;;  %s435_s26 = scalar_lea.sflag [#allocation4], %s434_s27 }
 0x16b   : > { %p652_p6 = pnand %p1178_p3, %p1177_p10 }
 0x16d   : > { %834 = dma.done.wait (!%p652_p6), %s435_s26, 256  }
 0x16e   : > { %836 = vsyncadd (!%p652_p6), %s435_s26, 4294967040  ;;  %s20_s17 = sadd.s32 1, %s859_s17   ;;  %s1179_s12 = smov %s843_s13 }
 0x16f   : > { %p17_p0 = scmp.ge.s32.totalorder %s20_s17, 4   ;;  %s1180_s13 = smov %s847_s14 }
 0x170   : > { %s1181_s14 = smov %s1011_s19  ;;  %s1182_s15 = smov %s855_s16 }
 0x171   : > { %s1183_s16 = smov %s1185_s30  ;;  %19 = sbr.rel (!%p17_p0) target bundleno = 7 (0x7), region = 98 }
 0x178   :  { %440 = vsyncpa [#allocation3], 1 }
 0x179   :  { %442 = vsyncpa [#allocation3 + $0x1], 1 }
 0x17a   :  { %443 = vsyncpa [#allocation6], 1 }
 0x17b   :  { %445 = vsyncpa [#allocation6 + $0x1], 1 }
 0x17c   :  { %446 = vsyncpa [#allocation4], 1 }
 0x17d   :  { %448 = vsyncpa [#allocation4 + $0x1], 1 }

</bundles_post_ra>
